<compile_context>
chip_gen: v6e
topology: v6e:2x2x1
jax: 0.10.0
libtpu: 0.0.40
codegen_flags: <defaults>
</compile_context>

<pallas_src>
import functools
import math

import jax
import jax.numpy as jnp
from jax.experimental import pallas as pl
from jax.experimental.pallas import tpu as pltpu

_LANE = 128
_VMEM_LIMIT_BYTES = 32 * 1024 * 1024   # explicit: > v5e's 16 MiB scoped default
_MAX_BLOCK_BYTES = 8 * 1024 * 1024     # safety valve on the physical block size
_DEFAULT_MIN_KERNEL_BYTES = 4 * 1024 * 1024  # below this, let XLA fuse a jnp clamp


def _round_up(x: int, m: int) -> int:
    return -(-x // m) * m


def _sublane(dtype) -> int:
    # Native second-minor tile height: 8 for 4-byte, 16 for 2-byte, 32 for 1-byte.
    return {4: 8, 2: 16, 1: 32}.get(jnp.dtype(dtype).itemsize, 8)


@functools.lru_cache(maxsize=1)
def _target_block_bytes() -> int:
    # v7x (64 MiB VMEM, ~3.2 TB/s HBM): larger blocks amortize the ~0.35 us
    # per-grid-step overhead.  v5e/v6e: 4 MiB is at the measured roofline plateau.
    try:
        vmem = getattr(pltpu.get_tpu_info(), "vmem_capacity_bytes", None)
        if vmem is not None and vmem <= 64 * 1024 * 1024:
            return 6 * 1024 * 1024
    except Exception:
        pass
    return 4 * 1024 * 1024


def _resolve_bounds(lower, upper, dtype):
    """Return (lower, upper, compute_dtype) with dtype-safe bounds."""
    d = jnp.dtype(dtype)
    if jnp.issubdtype(d, jnp.integer):
        info = jnp.iinfo(d)
        lo = int(min(max(math.ceil(lower), info.min), info.max))   # saturate, don't wrap
        hi = int(min(max(math.floor(upper), info.min), info.max))
        cdt = d if d.itemsize >= 4 else jnp.dtype(jnp.int32)        # clamp narrow ints in i32
        return lo, hi, cdt
    if jnp.issubdtype(d, jnp.floating) and d.itemsize < 2:
        return float(lower), float(upper), jnp.dtype(jnp.float32)   # fp8: clamp in f32
    return float(lower), float(upper), d


def _clamp_jnp(x, lower, upper, compute_dtype):
    y = x.astype(compute_dtype)
    lo = jnp.asarray(lower, dtype=compute_dtype)
    hi = jnp.asarray(upper, dtype=compute_dtype)
    return jnp.minimum(jnp.maximum(y, lo), hi).astype(x.dtype)


def _satlu_kernel(x_ref, o_ref, *, lower, upper, compute_dtype):
    # Pure VPU min/max with baked-in constants; memory-bound streaming kernel.
    x = x_ref[...]
    y = x.astype(compute_dtype)
    lo = jnp.asarray(lower, dtype=compute_dtype)
    hi = jnp.asarray(upper, dtype=compute_dtype)
    o_ref[...] = jnp.minimum(jnp.maximum(y, lo), hi).astype(o_ref.dtype)


def satlu(x, lower=0.0, upper=255.0, *, inplace=False,
          min_kernel_bytes=_DEFAULT_MIN_KERNEL_BYTES, force_kernel=False):
    """SatLU forward: elementwise clamp(x, lower, upper) for any shape/dtype.

    inplace=True reuses the input HBM buffer for the output
    (input_output_aliases), mirroring the module's `inplace` flag.
    """
    dtype = x.dtype
    itemsize = jnp.dtype(dtype).itemsize
    n = x.size
    lo, hi, compute_dtype = _resolve_bounds(lower, upper, dtype)

    # Small / mid-graph tensors: a bare clamp is best left to XLA fusion (zero
    # extra HBM traffic); a standalone kernel forces a dedicated read+write pass.
    if x.ndim < 2 or n == 0 or (not force_kernel and n * itemsize < min_kernel_bytes):
        return _clamp_jnp(x, lo, hi, compute_dtype)

    orig_shape = x.shape
    R, C = orig_shape[-2], orig_shape[-1]
    L = n // (R * C)
    # Collapsing *leading* dims only is layout-preserving on TPU (free under jit).
    # We deliberately do NOT relayout into a 1024-lane slab: that relayout is a
    # full extra HBM pass, which is exactly what we are trying to avoid.
    x3 = x.reshape(L, R, C)

    sub = _sublane(dtype)
    target_elems = max(1, _target_block_bytes() // itemsize)
    # Size blocks against the *physical* (tile-padded) footprint so small
    # trailing dims can't silently blow the VMEM budget.
    c_phys = _round_up(C, _LANE)
    r_phys = _round_up(R, sub)
    plane_phys = r_phys * c_phys

    if plane_phys >= target_elems:
        # One leading index per step; tile the row (second-minor) dim.
        rb = max(sub, (target_elems // c_phys) // sub * sub)
        rb = min(rb, r_phys)
        block = (1, rb, C)
        grid = (L, pl.cdiv(R, rb))
        index_map = lambda i, j: (i, j, 0)
        dims = ("parallel", "parallel")
        block_phys_elems = rb * c_phys
    else:
        lb = max(1, min(L, target_elems // plane_phys))
        # v7x megacore: guarantee >= 2 grid steps when the tensor allows it,
        # so the "parallel" axis shards across both TensorCores.
        if pl.cdiv(L, lb) < 2 and L >= 2:
            lb = pl.cdiv(L, 2)
        block = (lb, R, C)
        grid = (pl.cdiv(L, lb),)
        index_map = lambda i: (i, 0, 0)
        dims = ("parallel",)
        block_phys_elems = lb * plane_phys

    if block_phys_elems * itemsize > _MAX_BLOCK_BYTES:
        # TODO(synk): tile the last dim as well for degenerate shapes (huge
        # trailing dim); fall back to the fused clamp rather than risk VMEM OOM.
        return _clamp_jnp(x, lo, hi, compute_dtype)

    spec = pl.BlockSpec(block, index_map)
    kernel = functools.partial(_satlu_kernel, lower=lo, upper=hi,
                               compute_dtype=compute_dtype)

    out3 = pl.pallas_call(
        kernel,
        out_shape=jax.ShapeDtypeStruct((L, R, C), dtype),
        grid=grid,
        in_specs=[spec],
        out_specs=spec,
        input_output_aliases={0: 0} if inplace else {},
        compiler_params=pltpu.CompilerParams(
            dimension_semantics=dims,
            vmem_limit_bytes=_VMEM_LIMIT_BYTES,
        ),
        cost_estimate=pl.CostEstimate(
            flops=2 * n, transcendentals=0, bytes_accessed=2 * n * itemsize),
    )(x3)
    return out3.reshape(orig_shape)


def satlu_ref(x, lower=0.0, upper=255.0):
    lo, hi, cdt = _resolve_bounds(lower, upper, x.dtype)
    return _clamp_jnp(x, lo, hi, cdt)


if __name__ == "__main__":
    key = jax.random.PRNGKey(0)
    k0, k1, k2, k3 = jax.random.split(key, 4)

    # 1) Small PredNet-style NCHW activation, forced through the Pallas path.
    x = jax.random.uniform(k0, (2, 4, 16, 16), jnp.float32, minval=-100.0, maxval=400.0)
    out = jax.block_until_ready(satlu(x, 0.0, 255.0, force_kernel=True))
    assert out.shape == x.shape and out.dtype == x.dtype
    assert jnp.allclose(out, satlu_ref(x, 0.0, 255.0)), "f32 mismatch"

    # 2) Ragged / non-aligned shape: handled in-kernel (no pad, no slice).
    y = jax.random.uniform(k1, (2, 3, 17, 19), jnp.float32, minval=-100.0, maxval=400.0)
    out_y = jax.block_until_ready(satlu(y, force_kernel=True))
    assert jnp.allclose(out_y, satlu_ref(y)), "ragged-shape mismatch"

    # 3) bf16 (packed dtype, 16-row native tile).
    xb = x.astype(jnp.bfloat16)
    out_b = jax.block_until_ready(satlu(xb, force_kernel=True))
    assert out_b.dtype == jnp.bfloat16
    assert jnp.allclose(out_b.astype(jnp.float32),
                        satlu_ref(xb).astype(jnp.float32)), "bf16 mismatch"

    # 4) int8: upper bound saturates (255 -> 127) instead of wrapping to -1.
    xi = jax.random.randint(k2, (2, 4, 16, 16), -128, 128, dtype=jnp.int32).astype(jnp.int8)
    out_i = jax.block_until_ready(satlu(xi, 0, 255, force_kernel=True))
    assert out_i.dtype == jnp.int8
    expected_i = jnp.clip(xi.astype(jnp.int32), 0, 127).astype(jnp.int8)
    assert jnp.array_equal(out_i, expected_i), "int8 mismatch"

    # 5) Larger tensor takes the kernel path by default (multi-step parallel
    #    grid) and exercises the in-place aliasing path.
    xl = jax.random.uniform(k3, (2, 64, 96, 128), jnp.float32, minval=-100.0, maxval=400.0)
    expected_l = satlu_ref(xl)
    out_l = jax.block_until_ready(satlu(xl, inplace=True))
    assert jnp.allclose(out_l, expected_l), "large-tensor mismatch"

    # 6) Small tensors dispatch to the XLA-fused clamp by default.
    out_small = jax.block_until_ready(satlu(x))
    assert jnp.allclose(out_small, satlu_ref(x)), "fused-path mismatch"

    print("KERNEL_OK")
</pallas_src>

<mosaic_0001>
module attributes {stable_mosaic.version = 11 : i64} {
  func.func @_satlu_kernel(%arg0: i32, %arg1: memref<4x16x16xf32, #tpu.memory_space<vmem>>, %arg2: memref<4x16x16xf32, #tpu.memory_space<vmem>>) attributes {dimension_semantics = [#tpu.dimension_semantics<parallel>], iteration_bounds = array<i64: 2>, scalar_prefetch = 0 : i64, scratch_operands = 0 : i64, tpu.core_type = #tpu.core_type<tc>, window_params = [{transform_indices = @transform_0, window_bounds = array<i64: 4, 16, 16>}, {transform_indices = @transform_1, window_bounds = array<i64: 4, 16, 16>}]} {
    %c0 = arith.constant 0 : index
    %c0_0 = arith.constant 0 : index
    %c0_1 = arith.constant 0 : index
    %0 = vector.load %arg1[%c0, %c0_0, %c0_1] : memref<4x16x16xf32, #tpu.memory_space<vmem>>, vector<4x16x16xf32>
    %cst = arith.constant 0.000000e+00 : f32
    %1 = vector.broadcast %cst : f32 to vector<4x16x16xf32>
    %2 = arith.maximumf %0, %1 : vector<4x16x16xf32>
    %cst_2 = arith.constant 2.550000e+02 : f32
    %3 = vector.broadcast %cst_2 : f32 to vector<4x16x16xf32>
    %4 = arith.minimumf %2, %3 : vector<4x16x16xf32>
    %c0_3 = arith.constant 0 : index
    %c0_4 = arith.constant 0 : index
    %c0_5 = arith.constant 0 : index
    %5 = vector.load %arg2[%c0_3, %c0_4, %c0_5] : memref<4x16x16xf32, #tpu.memory_space<vmem>>, vector<4x16x16xf32>
    tpu.vector_store %arg2[%c0_3, %c0_4, %c0_5], %4 {strides = array<i32>} : memref<4x16x16xf32, #tpu.memory_space<vmem>>, vector<4x16x16xf32>,
    return
  }
  func.func @transform_0(%arg0: i32) -> (i32, i32, i32) {
    %c0_i32 = arith.constant 0 : i32
    %c0_i32_0 = arith.constant 0 : i32
    %c0_i32_1 = arith.constant 0 : i32
    return %arg0, %c0_i32, %c0_i32_0 : i32, i32, i32
  }
  func.func @transform_1(%arg0: i32) -> (i32, i32, i32) {
    %c0_i32 = arith.constant 0 : i32
    %c0_i32_0 = arith.constant 0 : i32
    %c0_i32_1 = arith.constant 0 : i32
    return %arg0, %c0_i32, %c0_i32_0 : i32, i32, i32
  }
}

</mosaic_0001>

<bundles_post_ra>
// kernel: tpu_custom_call.1
= control target key start
LH: loop header
LB: loop body
LE: loop exit
PB: predicated region body
PF: predicated region fallthrough
CT: control target
= control target key end

     0   :  { %6 = vsyncpa [#allocation3], 0  ;;  %s612_s0 = inlined_call_operand.hbm [shape: f32[8,16,16], index: 0, kind: input, shape index: {}]   ;;  %s613_s1 = inlined_call_operand.hbm [shape: f32[8,16,16], index: 1, kind: output, shape index: {}]  }
   0x1   :  { %8 = vsyncpa [#allocation3 + $0x1], 0 }
   0x2   :  { %9 = vsyncpa [#allocation4], 0 }
   0x3   :  { %11 = vsyncpa [#allocation4 + $0x1], 0  ;;  %s439_s6 = smov 0   ;;  %s441_s7 = smov 0  }
   0x4   :  { %s443_s8 = smov 0   ;;  %s445_s9 = smov 0  }
   0x5 LB: > { %s460_s10 = sadd.s32 4294967295, %s421_s9   ;;  %s259_s11 = sadd.s32 4294967294, %s421_s9   ;;  %s421_s9 = sphi %s445_s9, %s628_s9   ;;  %s417_s8 = sphi %s443_s8, %s627_s8   ;;  %s413_s7 = sphi %s441_s7, %s626_s7   ;;  %s409_s6 = sphi %s439_s6, %s625_s6  }
   0x6   : > { %s464_s12 = sadd.s32 1, %s421_s9   ;;  %s24_s13 = sadd.s32 1, %s417_s8 }
   0x7   : > { %s21_s14 = ssub.s32 %s421_s9, %s464_s12  ;;  %p31_p0 = scmp.ne.s32.totalorder %s417_s8, %s413_s7 }
   0x8   : > { %p22_p1 = scmp.eq.s32.totalorder %s21_s14, 0  ;;  %p32_p2 = scmp.eq.s32.totalorder %s421_s9, 0 }
   0x9   : > { %p37_p3 = scmp.ne.s32.totalorder %s413_s7, %s409_s6  ;;  %p38_p4 = scmp.eq.s32.totalorder %s460_s10, 0 }
   0xa   : > { %s476_s15 = scalar_select %p22_p1, %s417_s8, %s24_s13  }
   0xb   : > { %p478_p5 = por %p32_p2, %p31_p0  ;;  %p482_p6 = por %p38_p4, %p37_p3 }
   0xc   : > { %p61_p7 = scmp.eq.s32.totalorder %s460_s10, 1  ;;  %p67_p8 = scmp.eq.s32.totalorder %s259_s11, 1 }
   0xd   : > { %s617_s17 = scalar_select %p482_p6, 1, 0 }
   0xe   : > { %p291_p10 = scmp.lt.s32.totalorder %s421_s9, 2  ;;  %p489_p11 = por %p61_p7, %p31_p0 }
   0xf   : > { %p493_p12 = por %p67_p8, %p37_p3  ;;  %s87_s20 = sand.u32 1, %s417_s8  }
  0x10   : > { %s618_s18 = scalar_select %p489_p11, 1, 0 }
  0x11   : > { %s619_s19 = scalar_select %p493_p12, 1, 0 }
  0x12   : > { %s276_s21 = sshll.u32 %s421_s9, 10  ;;  %s262_s22 = sshll.u32 %s87_s20, 6 }
  0x13   : > { %s502_s25 = scalar_lea.hbm %s612_s0, %s276_s21  ;;  %s91_s26 = scalar_lea.vmem [#allocation2], %s262_s22 }
  0x14   : > { %s99_s27 = sshll.u32 %s91_s26, 4  ;;  %p506_p13 = pnand %p291_p10, %p478_p5  ;;  %s510_s27 = int_to_ptr.vmem [resolvable:$true] %s99_s27 }
  0x15   : > { %s512_s29 = scalar_lea.sflag [#allocation3], %s87_s20  ;;  %s329_s30 = scalar_lea.hbm %s502_s25, 1024 }
  0x16   : > { %p330_p0 = scmp.ne.s32.totalorder %s502_s25, %s329_s30  ;;  %p331_p1 = pneg %p506_p13 }
  0x17   : > { %s334_s4 = scalar_lea.hbm %s612_s0, 2048  ;;  %p335_p4 = scmp.lt.s32.totalorder %s502_s25, %s612_s0 }
  0x18   : > { %p332_p2 = pnand %p331_p1, %p330_p0  ;;  %p336_p5 = scmp.lt.s32.totalorder %s334_s4, %s329_s30 }
  0x1a   : > { %p333_p3 = pneg %p332_p2  ;;  %p337_p7 = por %p336_p5, %p335_p4 }
  0x1c   : > { %p338_p8 = pnand %p337_p7, %p333_p3 }
  0x1e   : > { %341 = shalt.err (!%p338_p8)
}
  0x1f   : > { %s342_s13 = scalar_lea.vmem %s510_s27, 1024  ;;  %s423_s14 = smov [#allocation2]  }
  0x20   : > { %p343_p10 = scmp.ne.s32.totalorder %s510_s27, %s342_s13  ;;  %s347_s16 = sshll.u32 %s423_s14, 4  ;;  %s348_s16 = int_to_ptr.vmem [resolvable:$false] %s347_s16 }
  0x21   : > { %s349_s20 = scalar_lea.vmem %s348_s16, 2048  ;;  %p350_p2 = scmp.lt.s32.totalorder %s510_s27, %s348_s16 }
  0x22   : > { %p345_p9 = pnand %p343_p10, %p331_p1  ;;  %p351_p12 = scmp.lt.s32.totalorder %s349_s20, %s342_s13 }
  0x24   : > { %p346_p0 = pneg %p345_p9  ;;  %p352_p11 = por %p351_p12, %p350_p2 }
  0x26   : > { %p353_p6 = pnand %p352_p11, %p346_p0 }
  0x28   : > { %356 = shalt.err (!%p353_p6)
}
  0x29   : > { %s424_s21 = smov 128   ;;  %s425_s22 = smov 8  }
  0x2a   : > { %286 = dma.hbm_to_vmem [thread:$0]  (!%p506_p13), %s502_s25, 1024, %s510_s27, %s512_s29, %s424_s21, %s424_s21, %s425_s22  }
  0x2b   : > { %p266_p9 = scmp.ge.s32.totalorder %s421_s9, 1  ;;  %p107_p1 = scmp.lt.s32.totalorder %s421_s9, 3 }
  0x2d   : > { %p108_p3 = pnand %p266_p9, %p107_p1 }
  0x2e   : > { %s536_s23 = sand.u32 (!%p108_p3), 1, %s413_s7   ;;  %p621_p6 = scmp.ne.s32.totalorder (!%p108_p3), %s617_s17, 0 }
  0x2f   : > { %111 = sbr.rel (%p108_p3) target bundleno = 80 (0x50), region = 24  ;;  %s267_s24 = sshll.u32 (!%p108_p3), %s536_s23, 6 }
  0x30   : > { %s114_s26 = scalar_lea.sflag (!%p108_p3), [#allocation3], %s536_s23  ;;  %s117_s30 = scalar_lea.vmem (!%p108_p3), [#allocation2], %s267_s24 }
  0x34   : > { %400 = dma.done.wait (%p621_p6), %s114_s26, 1024  }
  0x35   : > { %402 = vsyncadd (%p621_p6), %s114_s26, 4294966272  ;;  %v138_v0 = vld [vmem:[%s117_s30] sm:$0xff]  ;;  %vm162_vm0 = vcmask 130048   ;;  %s544_s25 = scalar_lea.vmem [#allocation5], %s267_s24  ;;  %v139_v1 = vld [vmem:[%s117_s30 + $0x8] sm:$0xff]  ;;  %s278_s17 = sshll.u32 %s460_s10, 10 }
  0x36   : > { %s186_s27 = sshll.u32 %s544_s25, 4  ;;  %v140_v2 = vld [vmem:[%s117_s30 + $0x10] sm:$0xff]  ;;  %v146_v3 = vmax.f32 %v138_v0, 0.0  ;;  %v147_v4 = vmax.f32 %v139_v1, 0.0  ;;  %v141_v6 = vld [vmem:[%s117_s30 + $0x18] sm:$0xff]  ;;  %v142_v7 = vld [vmem:[%s117_s30 + $0x20] sm:$0xff]  ;;  %s559_s29 = scalar_lea.hbm %s613_s1, %s278_s17  ;;  %s550_s27 = int_to_ptr.vmem [resolvable:$true] %s186_s27 }
  0x37   : > { %v148_v5 = vmax.f32 %v140_v2, 0.0  ;;  %v143_v8 = vld [vmem:[%s117_s30 + $0x28] sm:$0xff]  ;;  %v149_v9 = vmax.f32 %v141_v6, 0.0  ;;  %v150_v10 = vmax.f32 %v142_v7, 0.0  ;;  %v144_v12 = vld [vmem:[%s117_s30 + $0x30] sm:$0xff]  ;;  %v145_v13 = vld [vmem:[%s117_s30 + $0x38] sm:$0xff] }
  0x38   : > { %v151_v11 = vmax.f32 %v143_v8, 0.0  ;;  %v154_v14 = vmin.f32 %v146_v3, 255.0  ;;  %v155_v15 = vmin.f32 %v147_v4, 255.0  ;;  %v152_v17 = vmax.f32 %v144_v12, 0.0  ;;  %s172_s2 = scalar_lea.sflag [#allocation4], %s536_s23  ;;  %s357_s3 = scalar_lea.vmem %s550_s27, 1024 }
  0x39   : > { %v156_v16 = vmin.f32 %v148_v5, 255.0  ;;  %v157_v18 = vmin.f32 %v149_v9, 255.0  ;;  %v158_v19 = vmin.f32 %v150_v10, 255.0  ;;  %v153_v21 = vmax.f32 %v145_v13, 0.0  ;;  %p358_p11 = scmp.ne.s32.totalorder %s550_s27, %s357_s3  ;;  %p622_p12 = scmp.ne.s32.totalorder %s618_s18, 0 }
  0x3a   : > { %v159_v20 = vmin.f32 %v151_v11, 255.0  ;;  %163 = vst.msk [vmem:[%s544_s25] sm:$0xff] %vm162_vm0, %v154_v14  ;;  %164 = vst.msk [vmem:[%s544_s25 + $0x8] sm:$0xff] %vm162_vm0, %v155_v15  ;;  %v160_v22 = vmin.f32 %v152_v17, 255.0  ;;  %s426_s4 = smov [#allocation5]  }
  0x3b   : > { %165 = vst.msk [vmem:[%s544_s25 + $0x10] sm:$0xff] %vm162_vm0, %v156_v16  ;;  %166 = vst.msk [vmem:[%s544_s25 + $0x18] sm:$0xff] %vm162_vm0, %v157_v18  ;;  %v161_v23 = vmin.f32 %v153_v21, 255.0  ;;  %p359_p13 = pnand %p358_p11, %p622_p12  ;;  %s361_s5 = sshll.u32 %s426_s4, 4  ;;  %s362_s5 = int_to_ptr.vmem [resolvable:$false] %s361_s5 }
  0x3c   : > { %167 = vst.msk [vmem:[%s544_s25 + $0x20] sm:$0xff] %vm162_vm0, %v158_v19  ;;  %168 = vst.msk [vmem:[%s544_s25 + $0x28] sm:$0xff] %vm162_vm0, %v159_v20  ;;  %s363_s11 = scalar_lea.vmem %s362_s5, 2048  ;;  %p364_p5 = scmp.lt.s32.totalorder %s550_s27, %s362_s5 }
  0x3d   : > { %169 = vst.msk [vmem:[%s544_s25 + $0x30] sm:$0xff] %vm162_vm0, %v160_v22  ;;  %170 = vst.msk [vmem:[%s544_s25 + $0x38] sm:$0xff] %vm162_vm0, %v161_v23  ;;  %p360_p4 = pneg %p359_p13  ;;  %p365_p7 = scmp.lt.s32.totalorder %s363_s11, %s357_s3 }
  0x3f   : > { %p366_p8 = por %p365_p7, %p364_p5 }
  0x41   : > { %p367_p10 = pnand %p366_p8, %p360_p4 }
  0x43   : > { %370 = shalt.err (!%p367_p10)
}
  0x44   : > { %s371_s13 = scalar_lea.hbm %s559_s29, 1024  ;;  %s375_s20 = scalar_lea.hbm %s613_s1, 2048 }
  0x45   : > { %p372_p0 = scmp.ne.s32.totalorder %s559_s29, %s371_s13  ;;  %p376_p1 = scmp.lt.s32.totalorder %s559_s29, %s613_s1 }
  0x46   : > { %p377_p3 = scmp.lt.s32.totalorder %s375_s20, %s371_s13 }
  0x47   : > { %p373_p2 = pnand %p372_p0, %p622_p12 }
  0x48   : > { %p378_p6 = por %p377_p3, %p376_p1 }
  0x49   : > { %p374_p9 = pneg %p373_p2 }
  0x4b   : > { %p379_p11 = pnand %p378_p6, %p374_p9 }
  0x4d   : > { %382 = shalt.err (!%p379_p11)
}
  0x4e   : > { %s427_s24 = smov 128   ;;  %s428_s26 = smov 8  }
  0x4f   : > { %281 = dma.vmem_to_hbm [thread:$0]  (%p622_p12), %s550_s27, 1024, %s559_s29, %s172_s2, %s427_s24, %s427_s24, %s428_s26  }
  0x50 PF: > { %s201_s30 = sand.u32 1, %s409_s6   ;;  %p623_p13 = scmp.ne.s32.totalorder %s619_s19, 0 }
  0x51   : > { %p624_p4 = scmp.ge.s32.totalorder %s421_s9, 2  ;;  %s202_s25 = scalar_lea.sflag [#allocation4], %s201_s30 }
  0x53   : > { %p288_p5 = pnand %p624_p4, %p623_p13 }
  0x55   : > { %p289_p7 = pneg %p288_p5 }
  0x57   : > { %404 = dma.done.wait (%p289_p7), %s202_s25, 1024  }
  0x58   : > { %406 = vsyncadd (%p289_p7), %s202_s25, 4294966272  ;;  %p14_p8 = scmp.ge.s32.totalorder %s464_s12, 4   ;;  %s625_s6 = smov %s413_s7 }
  0x59   : > { %s626_s7 = smov %s417_s8  ;;  %s627_s8 = smov %s476_s15 }
  0x5a   : > { %s628_s9 = smov %s464_s12  ;;  %16 = sbr.rel (!%p14_p8) target bundleno = 5 (0x5), region = 69 }
  0x5f   :  { %207 = vsyncpa [#allocation3], 1 }
  0x60   :  { %209 = vsyncpa [#allocation3 + $0x1], 1 }
  0x61   :  { %210 = vsyncpa [#allocation4], 1 }
  0x62   :  { %212 = vsyncpa [#allocation4 + $0x1], 1 }

</bundles_post_ra>
